<compile_context>
chip_gen: v5e
topology: v5e:2x2
jax: 0.10.0
libtpu: 0.0.40
codegen_flags: <defaults>
</compile_context>

<pallas_src>
import jax
import jax.numpy as jnp
from jax import lax
from jax.experimental import pallas as pl
from jax.experimental.pallas import tpu as pltpu


def _round_up(n, k):
    return (n + k - 1) // k * k


def _nbytes(a):
    return a.size * jnp.dtype(a.dtype).itemsize


def _vmem_limit_bytes():
    cap = 128 * 1024 * 1024
    try:
        info = pltpu.get_tpu_info()
        cap = int(getattr(info, "vmem_capacity_bytes", cap) or cap)
    except Exception:
        pass
    # capacity minus headroom for compiler scratch, capped for v5e/v6e.
    return max(32 * 1024 * 1024, min(cap - 16 * 1024 * 1024, 110 * 1024 * 1024))


# --------------------------- kernels ---------------------------------------

def mlp_resident_kernel(x_ref, w1_ref, b1_ref, w2_ref, b2_ref, o_ref, acc_ref):
    """Weights VMEM-resident; in-kernel loop over mlp chunks.

    x_ref:  (TM, in_p)
    w1_ref: (nc, in_p, ck)   b1_ref: (nc, 1, ck)
    w2_ref: (nc, ck, out_p)  b2_ref: (1, out_p)
    acc_ref: (TM, out_p) f32 scratch
    """
    x = x_ref[...]
    acc_ref[...] = jnp.zeros_like(acc_ref)
    n_chunks = w1_ref.shape[0]

    def body(c, carry):
        # fc1 chunk: native-dtype MXU operands, f32 accumulate; bias + ReLU on f32.
        h = jnp.dot(x, w1_ref[c], preferred_element_type=jnp.float32)
        h = jnp.maximum(h + b1_ref[c].astype(jnp.float32), 0.0)
        # dropout1: identity in eval mode.
        # fc2 chunk accumulated into the f32 VMEM accumulator.
        acc_ref[...] += jnp.dot(h.astype(w2_ref.dtype), w2_ref[c],
                                preferred_element_type=jnp.float32)
        return carry

    lax.fori_loop(0, n_chunks, body, 0, unroll=n_chunks <= 8)
    o_ref[...] = (acc_ref[...] + b2_ref[...].astype(jnp.float32)).astype(o_ref.dtype)


def mlp_streamed_kernel(x_ref, w1_ref, b1_ref, w2_ref, b2_ref, o_ref, acc_ref):
    """Weight chunks streamed over a trailing 'arbitrary' grid axis.

    x_ref:  (TM, in_p)          (constant over the chunk axis -> fetched once)
    w1_ref: (1, in_p, ck)       b1_ref: (1, 1, ck)
    w2_ref: (1, ck, out_p)      b2_ref: (1, out_p)
    acc_ref: (TM, out_p) f32 scratch
    """
    c = pl.program_id(1)

    @pl.when(c == 0)
    def _():
        acc_ref[...] = jnp.zeros_like(acc_ref)

    h = jnp.dot(x_ref[...], w1_ref[0], preferred_element_type=jnp.float32)
    h = jnp.maximum(h + b1_ref[0].astype(jnp.float32), 0.0)
    # dropout1: identity in eval mode.
    acc_ref[...] += jnp.dot(h.astype(w2_ref.dtype), w2_ref[0],
                            preferred_element_type=jnp.float32)

    @pl.when(c == pl.num_programs(1) - 1)
    def _():
        o_ref[...] = (acc_ref[...]
                      + b2_ref[...].astype(jnp.float32)).astype(o_ref.dtype)


# --------------------------- wrapper ----------------------------------------

def mlp_block(x, w1, b1, w2, b2, *, tm=256, use_bf16_matmul=False,
              force_stream=False):
    """x: (..., in_dim) -> (..., out_dim).  Weights are (in, out) layout."""
    in_dim, mlp_dim = w1.shape
    out_dim = w2.shape[1]
    out_dtype = x.dtype
    lead_shape = x.shape[:-1]
    m = 1
    for d in lead_shape:
        m *= int(d)
    m = max(m, 1)

    if use_bf16_matmul and x.dtype == jnp.float32:
        # bf16 MXU operands, f32 accumulation (biases stay f32).
        x = x.astype(jnp.bfloat16)
        w1 = w1.astype(jnp.bfloat16)
        w2 = w2.astype(jnp.bfloat16)

    # ---- pad to lane/sublane-friendly shapes --------------------------------
    in_p = _round_up(in_dim, 128)
    mlp_p = _round_up(mlp_dim, 128)
    out_p = _round_up(out_dim, 128)

    # mlp-chunk size: <=512, a divisor of padded mlp_p so chunks are uniform.
    if mlp_p % 512 == 0:
        ck = 512
    elif mlp_p % 256 == 0:
        ck = 256
    else:
        ck = 128
    n_chunks = mlp_p // ck

    # M tile: shrink for small M so the parallel axis has >=2 tiles (megacore).
    tm = max(8, min(tm, _round_up(m, 8)))
    while pl.cdiv(m, tm) < 2 and tm > 8:
        tm = max(8, tm // 2)
    m_p = _round_up(m, tm)
    n_tiles = m_p // tm

    x2 = jnp.pad(x.reshape(m, in_dim), ((0, m_p - m), (0, in_p - in_dim)))
    w1p = jnp.pad(w1, ((0, in_p - in_dim), (0, mlp_p - mlp_dim)))
    b1p = jnp.pad(b1.reshape(1, mlp_dim), ((0, 0), (0, mlp_p - mlp_dim)))
    w2p = jnp.pad(w2, ((0, mlp_p - mlp_dim), (0, out_p - out_dim)))
    b2p = jnp.pad(b2.reshape(1, out_dim), ((0, 0), (0, out_p - out_dim)))

    # Pre-chunk the weights along the mlp dim: dynamic indexing then happens on
    # the leading (untiled) axis in the kernel -- no lane-dim dynamic slices.
    w1r = w1p.reshape(in_p, n_chunks, ck).transpose(1, 0, 2)   # (nc, in_p, ck)
    b1r = b1p.reshape(n_chunks, 1, ck)                         # (nc, 1, ck)
    w2r = w2p.reshape(n_chunks, ck, out_p)                     # (nc, ck, out_p)

    # ---- VMEM plan: resident weights vs streamed weight chunks --------------
    vmem_limit = _vmem_limit_bytes()
    weight_bytes = _nbytes(w1r) + _nbytes(b1r) + _nbytes(w2r) + _nbytes(b2p)
    resident_bytes = (weight_bytes                                      # 1-buffered
                      + 2 * tm * in_p * jnp.dtype(x2.dtype).itemsize    # x 2-buf
                      + 2 * tm * out_p * jnp.dtype(out_dtype).itemsize  # out 2-buf
                      + tm * out_p * 4)                                 # f32 acc
    use_resident = (not force_stream) and resident_bytes <= int(0.75 * vmem_limit)

    hbm_weight_bytes = weight_bytes if use_resident else weight_bytes * n_tiles
    cost = pl.CostEstimate(
        flops=2 * m_p * mlp_p * (in_p + out_p),
        transcendentals=0,
        bytes_accessed=(_nbytes(x2)
                        + m_p * out_p * jnp.dtype(out_dtype).itemsize
                        + hbm_weight_bytes),
    )

    def build(single_buffer):
        const = dict(pipeline_mode=pl.Buffered(1)) if single_buffer else {}
        if use_resident:
            grid = (n_tiles,)
            in_specs = [
                pl.BlockSpec((tm, in_p), lambda i: (i, 0)),
                pl.BlockSpec((n_chunks, in_p, ck), lambda i: (0, 0, 0), **const),
                pl.BlockSpec((n_chunks, 1, ck), lambda i: (0, 0, 0), **const),
                pl.BlockSpec((n_chunks, ck, out_p), lambda i: (0, 0, 0), **const),
                pl.BlockSpec((1, out_p), lambda i: (0, 0), **const),
            ]
            out_specs = pl.BlockSpec((tm, out_p), lambda i: (i, 0))
            kernel = mlp_resident_kernel
            semantics = ("parallel",)
        else:
            grid = (n_tiles, n_chunks)
            in_specs = [
                pl.BlockSpec((tm, in_p), lambda i, c: (i, 0)),
                pl.BlockSpec((1, in_p, ck), lambda i, c: (c, 0, 0)),
                pl.BlockSpec((1, 1, ck), lambda i, c: (c, 0, 0)),
                pl.BlockSpec((1, ck, out_p), lambda i, c: (c, 0, 0)),
                pl.BlockSpec((1, out_p), lambda i, c: (0, 0), **const),
            ]
            out_specs = pl.BlockSpec((tm, out_p), lambda i, c: (i, 0))
            kernel = mlp_streamed_kernel
            semantics = ("parallel", "arbitrary")

        return pl.pallas_call(
            kernel,
            out_shape=jax.ShapeDtypeStruct((m_p, out_p), out_dtype),
            grid_spec=pltpu.PrefetchScalarGridSpec(
                num_scalar_prefetch=0,
                grid=grid,
                in_specs=in_specs,
                out_specs=out_specs,
                scratch_shapes=[pltpu.VMEM((tm, out_p), jnp.float32)],
            ),
            compiler_params=pltpu.CompilerParams(
                dimension_semantics=semantics,
                vmem_limit_bytes=vmem_limit,
            ),
            cost_estimate=cost,
        )

    try:
        out2 = build(True)(x2, w1r, b1r, w2r, b2p)
    except Exception:
        # Fallback for jax versions where pipeline_mode=pl.Buffered(1) is rejected.
        out2 = build(False)(x2, w1r, b1r, w2r, b2p)

    # Strip padding and restore the leading shape.
    return out2[:m, :out_dim].reshape(*lead_shape, out_dim)


if __name__ == "__main__":
    # Small shapes: batch=2, seq=8, in_dim=16, mlp_dim=32, out_dim=16
    B, S, IN_DIM, MLP_DIM, OUT_DIM = 2, 8, 16, 32, 16

    key = jax.random.PRNGKey(0)
    kx, kw1, kb1, kw2, kb2 = jax.random.split(key, 5)

    x = jax.random.normal(kx, (B, S, IN_DIM), dtype=jnp.float32)

    # Deterministic param init (Kaiming-uniform-like scaling, synthetic values).
    bound1 = 1.0 / (IN_DIM ** 0.5)
    bound2 = 1.0 / (MLP_DIM ** 0.5)
    w1 = jax.random.uniform(kw1, (IN_DIM, MLP_DIM), jnp.float32, -bound1, bound1)
    b1 = jax.random.uniform(kb1, (MLP_DIM,), jnp.float32, -bound1, bound1)
    w2 = jax.random.uniform(kw2, (MLP_DIM, OUT_DIM), jnp.float32, -bound2, bound2)
    b2 = jax.random.uniform(kb2, (OUT_DIM,), jnp.float32, -bound2, bound2)

    # Pure-JAX reference (fc1 -> relu -> fc2, dropout = identity in eval mode).
    # TODO(synk): training-mode dropout (pltpu.prng_random_bits mask) not emitted.
    ref = jnp.maximum(x @ w1 + b1, 0.0) @ w2 + b2

    # 1) default: f32 operands, resident-weight path.
    out = jax.block_until_ready(mlp_block(x, w1, b1, w2, b2))
    assert out.shape == (B, S, OUT_DIM)
    assert jnp.allclose(out, ref, atol=1e-5, rtol=1e-5)

    # 2) streamed-weight path (what a v7x-sized FFN would take); still exact.
    out_s = jax.block_until_ready(mlp_block(x, w1, b1, w2, b2, force_stream=True))
    assert jnp.allclose(out_s, ref, atol=1e-5, rtol=1e-5)

    # 3) bf16 MXU operands with f32 accumulation (fast path for f32 inputs).
    out_b = jax.block_until_ready(mlp_block(x, w1, b1, w2, b2, use_bf16_matmul=True))
    assert jnp.allclose(out_b, ref, atol=5e-2, rtol=5e-2)

    print("KERNEL_OK")
</pallas_src>

<mosaic_0001>
module attributes {stable_mosaic.version = 11 : i64} {
  func.func @mlp_resident_kernel(%arg0: i32, %arg1: memref<8x128xf32, #tpu.memory_space<vmem>>, %arg2: memref<1x128x128xf32, #tpu.memory_space<vmem>>, %arg3: memref<1x1x128xf32, #tpu.memory_space<vmem>>, %arg4: memref<1x128x128xf32, #tpu.memory_space<vmem>>, %arg5: memref<1x128xf32, #tpu.memory_space<vmem>>, %arg6: memref<8x128xf32, #tpu.memory_space<vmem>>, %arg7: memref<8x128xf32, #tpu.memory_space<vmem>>) attributes {dimension_semantics = [#tpu.dimension_semantics<parallel>], iteration_bounds = array<i64: 2>, scalar_prefetch = 0 : i64, scratch_operands = 1 : i64, tpu.core_type = #tpu.core_type<tc>, window_params = [{transform_indices = @transform_0, window_bounds = array<i64: 8, 128>}, {pipeline_mode = #tpu.pipeline_mode<synchronous>, transform_indices = @transform_1, window_bounds = array<i64: 1, 128, 128>}, {pipeline_mode = #tpu.pipeline_mode<synchronous>, transform_indices = @transform_2, window_bounds = array<i64: 1, 1, 128>}, {pipeline_mode = #tpu.pipeline_mode<synchronous>, transform_indices = @transform_3, window_bounds = array<i64: 1, 128, 128>}, {pipeline_mode = #tpu.pipeline_mode<synchronous>, transform_indices = @transform_4, window_bounds = array<i64: 1, 128>}, {transform_indices = @transform_5, window_bounds = array<i64: 8, 128>}]} {
    %c0 = arith.constant 0 : index
    %c0_0 = arith.constant 0 : index
    %0 = vector.load %arg1[%c0, %c0_0] : memref<8x128xf32, #tpu.memory_space<vmem>>, vector<8x128xf32>
    %cst = arith.constant 0.000000e+00 : f32
    %1 = vector.broadcast %cst : f32 to vector<8x128xf32>
    %c0_1 = arith.constant 0 : index
    %c0_2 = arith.constant 0 : index
    %2 = vector.load %arg7[%c0_1, %c0_2] : memref<8x128xf32, #tpu.memory_space<vmem>>, vector<8x128xf32>
    tpu.vector_store %arg7[%c0_1, %c0_2], %1 {strides = array<i32>} : memref<8x128xf32, #tpu.memory_space<vmem>>, vector<8x128xf32>,
    %c0_i32 = arith.constant 0 : i32
    %3 = arith.index_cast %c0_i32 : i32 to index
    %c0_3 = arith.constant 0 : index
    %c0_4 = arith.constant 0 : index
    %4 = vector.load %arg2[%3, %c0_3, %c0_4] : memref<1x128x128xf32, #tpu.memory_space<vmem>>, vector<1x128x128xf32>
    %5 = vector.shape_cast %4 : vector<1x128x128xf32> to vector<128x128xf32>
    %cst_5 = arith.constant dense<0.000000e+00> : vector<8x128xf32>
    %6 = tpu.matmul %0, %5, %cst_5 {dimension_numbers = #tpu.dot_dimension_numbers<[1], [0], [0], [1], [0, 0, 1, 1], [], []>} : vector<8x128xf32>, vector<128x128xf32>, vector<8x128xf32> -> vector<8x128xf32>
    %7 = arith.index_cast %c0_i32 : i32 to index
    %c0_6 = arith.constant 0 : index
    %c0_7 = arith.constant 0 : index
    %8 = vector.load %arg3[%7, %c0_6, %c0_7] : memref<1x1x128xf32, #tpu.memory_space<vmem>>, vector<1x1x128xf32>
    %9 = vector.shape_cast %8 : vector<1x1x128xf32> to vector<1x128xf32>
    %10 = vector.broadcast %9 : vector<1x128xf32> to vector<8x128xf32>
    %11 = arith.addf %6, %10 : vector<8x128xf32>
    %cst_8 = arith.constant 0.000000e+00 : f32
    %12 = vector.broadcast %cst_8 : f32 to vector<8x128xf32>
    %13 = arith.maximumf %11, %12 : vector<8x128xf32>
    %c0_9 = arith.constant 0 : index
    %c0_10 = arith.constant 0 : index
    %14 = vector.load %arg7[%c0_9, %c0_10] : memref<8x128xf32, #tpu.memory_space<vmem>>, vector<8x128xf32>
    %15 = arith.index_cast %c0_i32 : i32 to index
    %c0_11 = arith.constant 0 : index
    %c0_12 = arith.constant 0 : index
    %16 = vector.load %arg4[%15, %c0_11, %c0_12] : memref<1x128x128xf32, #tpu.memory_space<vmem>>, vector<1x128x128xf32>
    %17 = vector.shape_cast %16 : vector<1x128x128xf32> to vector<128x128xf32>
    %cst_13 = arith.constant dense<0.000000e+00> : vector<8x128xf32>
    %18 = tpu.matmul %13, %17, %cst_13 {dimension_numbers = #tpu.dot_dimension_numbers<[1], [0], [0], [1], [0, 0, 1, 1], [], []>} : vector<8x128xf32>, vector<128x128xf32>, vector<8x128xf32> -> vector<8x128xf32>
    %19 = arith.addf %14, %18 : vector<8x128xf32>
    %c0_14 = arith.constant 0 : index
    %c0_15 = arith.constant 0 : index
    %20 = vector.load %arg7[%c0_14, %c0_15] : memref<8x128xf32, #tpu.memory_space<vmem>>, vector<8x128xf32>
    tpu.vector_store %arg7[%c0_14, %c0_15], %19 {strides = array<i32>} : memref<8x128xf32, #tpu.memory_space<vmem>>, vector<8x128xf32>,
    %c1_i32 = arith.constant 1 : i32
    %c0_16 = arith.constant 0 : index
    %c0_17 = arith.constant 0 : index
    %21 = vector.load %arg7[%c0_16, %c0_17] : memref<8x128xf32, #tpu.memory_space<vmem>>, vector<8x128xf32>
    %c0_18 = arith.constant 0 : index
    %c0_19 = arith.constant 0 : index
    %22 = vector.load %arg5[%c0_18, %c0_19] : memref<1x128xf32, #tpu.memory_space<vmem>>, vector<1x128xf32>
    %23 = vector.broadcast %22 : vector<1x128xf32> to vector<8x128xf32>
    %24 = arith.addf %21, %23 : vector<8x128xf32>
    %c0_20 = arith.constant 0 : index
    %c0_21 = arith.constant 0 : index
    %25 = vector.load %arg6[%c0_20, %c0_21] : memref<8x128xf32, #tpu.memory_space<vmem>>, vector<8x128xf32>
    tpu.vector_store %arg6[%c0_20, %c0_21], %24 {strides = array<i32>} : memref<8x128xf32, #tpu.memory_space<vmem>>, vector<8x128xf32>,
    return
  }
  func.func @transform_0(%arg0: i32) -> (i32, i32) {
    %c0_i32 = arith.constant 0 : i32
    %c0_i32_0 = arith.constant 0 : i32
    return %arg0, %c0_i32 : i32, i32
  }
  func.func @transform_1(%arg0: i32) -> (i32, i32, i32) {
    %c0_i32 = arith.constant 0 : i32
    %c0_i32_0 = arith.constant 0 : i32
    %c0_i32_1 = arith.constant 0 : i32
    %c0_i32_2 = arith.constant 0 : i32
    return %c0_i32, %c0_i32_0, %c0_i32_1 : i32, i32, i32
  }
  func.func @transform_2(%arg0: i32) -> (i32, i32, i32) {
    %c0_i32 = arith.constant 0 : i32
    %c0_i32_0 = arith.constant 0 : i32
    %c0_i32_1 = arith.constant 0 : i32
    %c0_i32_2 = arith.constant 0 : i32
    return %c0_i32, %c0_i32_0, %c0_i32_1 : i32, i32, i32
  }
  func.func @transform_3(%arg0: i32) -> (i32, i32, i32) {
    %c0_i32 = arith.constant 0 : i32
    %c0_i32_0 = arith.constant 0 : i32
    %c0_i32_1 = arith.constant 0 : i32
    %c0_i32_2 = arith.constant 0 : i32
    return %c0_i32, %c0_i32_0, %c0_i32_1 : i32, i32, i32
  }
  func.func @transform_4(%arg0: i32) -> (i32, i32) {
    %c0_i32 = arith.constant 0 : i32
    %c0_i32_0 = arith.constant 0 : i32
    %c0_i32_1 = arith.constant 0 : i32
    return %c0_i32, %c0_i32_0 : i32, i32
  }
  func.func @transform_5(%arg0: i32) -> (i32, i32) {
    %c0_i32 = arith.constant 0 : i32
    %c0_i32_0 = arith.constant 0 : i32
    return %arg0, %c0_i32 : i32, i32
  }
}

module attributes {stable_mosaic.version = 11 : i64} {
  func.func @mlp_resident_kernel(%arg0: i32, %arg1: memref<8x128xf32, #tpu.memory_space<vmem>>, %arg2: memref<1x128x128xf32, #tpu.memory_space<vmem>>, %arg3: memref<1x1x128xf32, #tpu.memory_space<vmem>>, %arg4: memref<1x128x128xf32, #tpu.memory_space<vmem>>, %arg5: memref<1x128xf32, #tpu.memory_space<vmem>>, %arg6: memref<8x128xf32, #tpu.memory_space<vmem>>, %arg7: memref<8x128xf32, #tpu.memory_space<vmem>>) attributes {dimension_semantics = [#tpu.dimension_semantics<parallel>], iteration_bounds = array<i64: 2>, scalar_prefetch = 0 : i64, scratch_operands = 1 : i64, tpu.core_type = #tpu.core_type<tc>, window_params = [{transform_indices = @transform_0, window_bounds = array<i64: 8, 128>}, {pipeline_mode = #tpu.pipeline_mode<synchronous>, transform_indices = @transform_1, window_bounds = array<i64: 1, 128, 128>}, {pipeline_mode = #tpu.pipeline_mode<synchronous>, transform_indices = @transform_2, window_bounds = array<i64: 1, 1, 128>}, {pipeline_mode = #tpu.pipeline_mode<synchronous>, transform_indices = @transform_3, window_bounds = array<i64: 1, 128, 128>}, {pipeline_mode = #tpu.pipeline_mode<synchronous>, transform_indices = @transform_4, window_bounds = array<i64: 1, 128>}, {transform_indices = @transform_5, window_bounds = array<i64: 8, 128>}]} {
    %c0 = arith.constant 0 : index
    %c0_0 = arith.constant 0 : index
    %0 = vector.load %arg1[%c0, %c0_0] : memref<8x128xf32, #tpu.memory_space<vmem>>, vector<8x128xf32>
    %cst = arith.constant 0.000000e+00 : f32
    %1 = vector.broadcast %cst : f32 to vector<8x128xf32>
    %c0_1 = arith.constant 0 : index
    %c0_2 = arith.constant 0 : index
    %2 = vector.load %arg7[%c0_1, %c0_2] : memref<8x128xf32, #tpu.memory_space<vmem>>, vector<8x128xf32>
    tpu.vector_store %arg7[%c0_1, %c0_2], %1 {strides = array<i32>} : memref<8x128xf32, #tpu.memory_space<vmem>>, vector<8x128xf32>,
    %c0_i32 = arith.constant 0 : i32
    %3 = arith.index_cast %c0_i32 : i32 to index
    %c0_3 = arith.constant 0 : index
    %c0_4 = arith.constant 0 : index
    %4 = vector.load %arg2[%3, %c0_3, %c0_4] : memref<1x128x128xf32, #tpu.memory_space<vmem>>, vector<1x128x128xf32>
    %5 = vector.shape_cast %4 : vector<1x128x128xf32> to vector<128x128xf32>
    %cst_5 = arith.constant dense<0.000000e+00> : vector<8x128xf32>
    %6 = tpu.matmul %0, %5, %cst_5 {dimension_numbers = #tpu.dot_dimension_numbers<[1], [0], [0], [1], [0, 0, 1, 1], [], []>} : vector<8x128xf32>, vector<128x128xf32>, vector<8x128xf32> -> vector<8x128xf32>
    %7 = arith.index_cast %c0_i32 : i32 to index
    %c0_6 = arith.constant 0 : index
    %c0_7 = arith.constant 0 : index
    %8 = vector.load %arg3[%7, %c0_6, %c0_7] : memref<1x1x128xf32, #tpu.memory_space<vmem>>, vector<1x1x128xf32>
    %9 = vector.shape_cast %8 : vector<1x1x128xf32> to vector<1x128xf32>
    %10 = vector.broadcast %9 : vector<1x128xf32> to vector<8x128xf32>
    %11 = arith.addf %6, %10 : vector<8x128xf32>
    %cst_8 = arith.constant 0.000000e+00 : f32
    %12 = vector.broadcast %cst_8 : f32 to vector<8x128xf32>
    %13 = arith.maximumf %11, %12 : vector<8x128xf32>
    %c0_9 = arith.constant 0 : index
    %c0_10 = arith.constant 0 : index
    %14 = vector.load %arg7[%c0_9, %c0_10] : memref<8x128xf32, #tpu.memory_space<vmem>>, vector<8x128xf32>
    %15 = arith.index_cast %c0_i32 : i32 to index
    %c0_11 = arith.constant 0 : index
    %c0_12 = arith.constant 0 : index
    %16 = vector.load %arg4[%15, %c0_11, %c0_12] : memref<1x128x128xf32, #tpu.memory_space<vmem>>, vector<1x128x128xf32>
    %17 = vector.shape_cast %16 : vector<1x128x128xf32> to vector<128x128xf32>
    %cst_13 = arith.constant dense<0.000000e+00> : vector<8x128xf32>
    %18 = tpu.matmul %13, %17, %cst_13 {dimension_numbers = #tpu.dot_dimension_numbers<[1], [0], [0], [1], [0, 0, 1, 1], [], []>} : vector<8x128xf32>, vector<128x128xf32>, vector<8x128xf32> -> vector<8x128xf32>
    %19 = arith.addf %14, %18 : vector<8x128xf32>
    %c0_14 = arith.constant 0 : index
    %c0_15 = arith.constant 0 : index
    %20 = vector.load %arg7[%c0_14, %c0_15] : memref<8x128xf32, #tpu.memory_space<vmem>>, vector<8x128xf32>
    tpu.vector_store %arg7[%c0_14, %c0_15], %19 {strides = array<i32>} : memref<8x128xf32, #tpu.memory_space<vmem>>, vector<8x128xf32>,
    %c1_i32 = arith.constant 1 : i32
    %c0_16 = arith.constant 0 : index
    %c0_17 = arith.constant 0 : index
    %21 = vector.load %arg7[%c0_16, %c0_17] : memref<8x128xf32, #tpu.memory_space<vmem>>, vector<8x128xf32>
    %c0_18 = arith.constant 0 : index
    %c0_19 = arith.constant 0 : index
    %22 = vector.load %arg5[%c0_18, %c0_19] : memref<1x128xf32, #tpu.memory_space<vmem>>, vector<1x128xf32>
    %23 = vector.broadcast %22 : vector<1x128xf32> to vector<8x128xf32>
    %24 = arith.addf %21, %23 : vector<8x128xf32>
    %c0_20 = arith.constant 0 : index
    %c0_21 = arith.constant 0 : index
    %25 = vector.load %arg6[%c0_20, %c0_21] : memref<8x128xf32, #tpu.memory_space<vmem>>, vector<8x128xf32>
    tpu.vector_store %arg6[%c0_20, %c0_21], %24 {strides = array<i32>} : memref<8x128xf32, #tpu.memory_space<vmem>>, vector<8x128xf32>,
    return
  }
  func.func @transform_0(%arg0: i32) -> (i32, i32) {
    %c0_i32 = arith.constant 0 : i32
    %c0_i32_0 = arith.constant 0 : i32
    return %arg0, %c0_i32 : i32, i32
  }
  func.func @transform_1(%arg0: i32) -> (i32, i32, i32) {
    %c0_i32 = arith.constant 0 : i32
    %c0_i32_0 = arith.constant 0 : i32
    %c0_i32_1 = arith.constant 0 : i32
    %c0_i32_2 = arith.constant 0 : i32
    return %c0_i32, %c0_i32_0, %c0_i32_1 : i32, i32, i32
  }
  func.func @transform_2(%arg0: i32) -> (i32, i32, i32) {
    %c0_i32 = arith.constant 0 : i32
    %c0_i32_0 = arith.constant 0 : i32
    %c0_i32_1 = arith.constant 0 : i32
    %c0_i32_2 = arith.constant 0 : i32
    return %c0_i32, %c0_i32_0, %c0_i32_1 : i32, i32, i32
  }
  func.func @transform_3(%arg0: i32) -> (i32, i32, i32) {
    %c0_i32 = arith.constant 0 : i32
    %c0_i32_0 = arith.constant 0 : i32
    %c0_i32_1 = arith.constant 0 : i32
    %c0_i32_2 = arith.constant 0 : i32
    return %c0_i32, %c0_i32_0, %c0_i32_1 : i32, i32, i32
  }
  func.func @transform_4(%arg0: i32) -> (i32, i32) {
    %c0_i32 = arith.constant 0 : i32
    %c0_i32_0 = arith.constant 0 : i32
    %c0_i32_1 = arith.constant 0 : i32
    return %c0_i32, %c0_i32_0 : i32, i32
  }
  func.func @transform_5(%arg0: i32) -> (i32, i32) {
    %c0_i32 = arith.constant 0 : i32
    %c0_i32_0 = arith.constant 0 : i32
    return %arg0, %c0_i32 : i32, i32
  }
}

</mosaic_0001>

<bundles_post_ra>
// kernel: tpu_custom_call.1
= control target key start
LH: loop header
LB: loop body
LE: loop exit
PB: predicated region body
PF: predicated region fallthrough
CT: control target
= control target key end

     0   :  { %10 = vsyncpa [#allocation4], 0  ;;  %s910_s0 = inlined_call_operand.hbm [shape: f32[16,128], index: 0, kind: input, shape index: {}]   ;;  %s911_s1 = inlined_call_operand.hbm [shape: f32[1,128,128], index: 1, kind: input, shape index: {}]   ;;  %s912_s2 = inlined_call_operand.vmem [shape: f32[1,1,128], index: 2, kind: input, shape index: {}]   ;;  %s913_s3 = inlined_call_operand.hbm [shape: f32[1,128,128], index: 3, kind: input, shape index: {}]   ;;  %s914_s4 = inlined_call_operand.vmem [shape: f32[1,128], index: 4, kind: input, shape index: {}]   ;;  %s915_s5 = inlined_call_operand.hbm [shape: f32[16,128], index: 5, kind: output, shape index: {}]  }
   0x1   :  { %12 = vsyncpa [#allocation4 + $0x1], 0 }
   0x2   :  { %13 = vsyncpa [#allocation7], 0 }
   0x3   :  { %14 = vsyncpa [#allocation5], 0 }
   0x4   :  { %16 = vsyncpa [#allocation5 + $0x1], 0  ;;  %s752_s18 = smov 0   ;;  %s754_s19 = smov 0  }
   0x5   :  { %s756_s20 = smov 0   ;;  %s758_s21 = smov 0  }
   0x6 LB: > { %s174_s24 = sshll.u32 %s911_s1, 4  ;;  %s776_s25 = sadd.s32 4294967295, %s716_s21   ;;  %s716_s21 = sphi %s758_s21, %s926_s21   ;;  %s712_s20 = sphi %s756_s20, %s925_s20   ;;  %s708_s19 = sphi %s754_s19, %s924_s19   ;;  %s704_s18 = sphi %s752_s18, %s923_s18   ;;  %s175_s24 = int_to_ptr.hbm [resolvable:$true] %s174_s24 }
   0x7   : > { %p470_p0 = scmp.ge.s32.totalorder %s716_s21, 1  ;;  %p43_p1 = scmp.eq.s32.totalorder %s776_s25, 0 }
   0x8   : > { %p163_p2 = scmp.lt.s32.totalorder %s716_s21, 3  ;;  %s718_s27 = smov [#allocation6]  }
   0x9   : > { %s176_s28 = sshll.u32 %s718_s27, 4  ;;  %s191_s6 = sshll.u32 %s913_s3, 4  ;;  %s177_s28 = int_to_ptr.vmem [resolvable:$true] %s176_s28  ;;  %s192_s6 = int_to_ptr.hbm [resolvable:$true] %s191_s6 }
   0xa   : > { %p781_p3 = pnand %p470_p0, %p163_p2  ;;  %s719_s7 = smov [#allocation8]  }
   0xb   : > { %s193_s8 = sshll.u32 %s719_s7, 4  ;;  %s720_s9 = smov 128   ;;  %s194_s8 = int_to_ptr.vmem [resolvable:$true] %s193_s8 }
   0xc   : > { %p497_p4 = pneg %p781_p3  ;;  %s721_s10 = smov 8  }
   0xd   : > { %s469_s11 = sadd.s32 4294967294, %s716_s21   ;;  %s795_s12 = sadd.s32 1, %s716_s21  }
   0xe   : > { %p498_p6 = pnand %p497_p4, %p43_p1  ;;  %s26_s13 = ssub.s32 %s716_s21, %s795_s12 }
   0xf   : > { %s29_s14 = sadd.s32 1, %s712_s20  ;;  %p27_p7 = scmp.eq.s32.totalorder %s26_s13, 0 }
  0x10   : > { %500 = dma.hbm_to_vmem [thread:$0]  (!%p498_p6), %s175_s24, 2048, %s177_s28, [#allocation7], %s720_s9, %s720_s9, %s721_s10  }
  0x11   : > { %503 = dma.hbm_to_vmem [thread:$0]  (!%p498_p6), %s192_s6, 2048, %s194_s8, [#allocation7], %s720_s9, %s720_s9, %s721_s10  }
  0x12   : > { %p36_p8 = scmp.ne.s32.totalorder %s712_s20, %s708_s19  ;;  %p37_p9 = scmp.eq.s32.totalorder %s716_s21, 0 }
  0x13   : > { %p42_p10 = scmp.ne.s32.totalorder %s708_s19, %s704_s18  ;;  %p150_p13 = scmp.eq.s32.totalorder %s776_s25, 1 }
  0x14   : > { %s806_s15 = scalar_select %p27_p7, %s712_s20, %s29_s14  }
  0x15   : > { %p808_p11 = por %p37_p9, %p36_p8  ;;  %p814_p12 = por %p43_p1, %p42_p10 }
  0x16   : > { %p156_p0 = scmp.eq.s32.totalorder %s469_s11, 1  ;;  %p514_p2 = scmp.lt.s32.totalorder %s716_s21, 2 }
  0x17   : > { %s210_s22 = sand.u32 1, %s712_s20   ;;  %p821_p4 = por %p150_p13, %p36_p8 }
  0x18   : > { %p825_p6 = por %p156_p0, %p42_p10  ;;  %s474_s27 = sshll.u32 %s210_s22, 3 }
  0x19   : > { %s475_s28 = sshll.u32 %s716_s21, 3  ;;  %s214_s7 = scalar_lea.vmem [#allocation3], %s474_s27 }
  0x1a   : > { %s218_s6 = scalar_lea.hbm %s910_s0, %s475_s28  ;;  %s222_s8 = sshll.u32 %s214_s7, 4  ;;  %s223_s8 = int_to_ptr.vmem [resolvable:$true] %s222_s8 }
  0x1b   : > { %s220_s9 = sshll.u32 %s218_s6, 4  ;;  %p835_p7 = pnand %p514_p2, %p808_p11  ;;  %s221_s9 = int_to_ptr.hbm [resolvable:$true] %s220_s9 }
  0x1c   : > { %s211_s11 = scalar_lea.sflag [#allocation4], %s210_s22  ;;  %s616_s13 = sshra.s32 %s221_s9, 4  ;;  %s617_s13 = int_to_ptr.hbm [resolvable:$true] %s616_s13 }
  0x1d   : > { %s618_s14 = scalar_lea.hbm %s617_s13, 8  ;;  %p620_p9 = pneg %p835_p7 }
  0x1e   : > { %p619_p8 = scmp.ne.s32.totalorder %s617_s13, %s618_s14  ;;  %s623_s29 = scalar_lea.hbm %s910_s0, 16 }
  0x1f   : > { %p624_p11 = scmp.lt.s32.totalorder %s617_s13, %s910_s0  ;;  %p625_p0 = scmp.lt.s32.totalorder %s623_s29, %s618_s14 }
  0x20   : > { %p621_p10 = pnand %p620_p9, %p619_p8 }
  0x21   : > { %p626_p2 = por %p625_p0, %p624_p11 }
  0x22   : > { %p622_p13 = pneg %p621_p10 }
  0x24   : > { %p627_p5 = pnand %p626_p2, %p622_p13 }
  0x26   : > { %630 = shalt.err (!%p627_p5)
}
  0x27   : > { %507 = dma.hbm_to_vmem [thread:$0]  (!%p835_p7), %s221_s9, 128, %s223_s8, %s211_s11  }
  0x28   : > { %231 = sbr.rel (%p781_p3) target bundleno = 341 (0x155), region = 40  ;;  %s852_s22 = sand.u32 (!%p781_p3), 1, %s708_s19  }
  0x29   : > { %s477_s6 = sshll.u32 (!%p781_p3), %s852_s22, 3  ;;  %s234_s7 = scalar_lea.sflag (!%p781_p3), [#allocation4], %s852_s22 }
  0x2a   : > { %s858_s13 = scalar_lea.vmem (!%p781_p3), [#allocation3], %s477_s6 }
  0x2d   : > { %691 = dma.done.wait (%p814_p12), %s234_s7, 128  }
  0x2e   : > { %693 = vsyncadd (%p814_p12), %s234_s7, 4294967168 }
  0x2f   : > { %695 = dma.done.wait (%p43_p1), [#allocation7], 4096  }
  0x30   : > { %697 = vsyncadd (%p43_p1), [#allocation7], 4294963200  ;;  %v292_v0 = vld [vmem:[#allocation6 + $0x78] sm:$0xff]  ;;  %v291_v1 = vld [vmem:[#allocation6 + $0x70] sm:$0xff]  ;;  %s482_s8 = sshll.u32 %s776_s25, 3  ;;  %s274_s28 = scalar_lea.vmem [#allocation9], %s477_s6 }
  0x31   : > { %297 = vmatpush.msra.mxu0 %v292_v0  ;;  %v290_v2 = vld [vmem:[#allocation6 + $0x68] sm:$0xff]  ;;  %v289_v3 = vld [vmem:[#allocation6 + $0x60] sm:$0xff]  ;;  %v334_v4 = vld [vmem:[#allocation8 + $0x78] sm:$0xff]  ;;  %s375_s11 = scalar_lea.hbm %s915_s5, %s482_s8  ;;  %s377_s29 = sshll.u32 %s274_s28, 4  ;;  %s378_s29 = int_to_ptr.vmem [resolvable:$true] %s377_s29 }
  0x32   : > { %v288_v5 = vld [vmem:[#allocation6 + $0x58] sm:$0xff]  ;;  %335 = vmatpush.msra.mxu1 %v334_v4  ;;  %v333_v6 = vld [vmem:[#allocation8 + $0x70] sm:$0xff]  ;;  %v332_v7 = vld [vmem:[#allocation8 + $0x68] sm:$0xff]  ;;  %s379_s30 = sshll.u32 %s375_s11, 4  ;;  %s365_s16 = scalar_lea.sflag [#allocation5], %s852_s22  ;;  %s380_s30 = int_to_ptr.hbm [resolvable:$true] %s379_s30 }
  0x33   : > { %298 = vmatpush.msra.mxu0 %v291_v1  ;;  %v287_v8 = vld [vmem:[#allocation6 + $0x50] sm:$0xff]  ;;  %v331_v9 = vld [vmem:[#allocation8 + $0x60] sm:$0xff]  ;;  %v286_v10 = vld [vmem:[#allocation6 + $0x48] sm:$0xff]  ;;  %s660_s25 = sshra.s32 %s380_s30, 4  ;;  %s666_s17 = scalar_lea.hbm %s915_s5, 16  ;;  %s661_s25 = int_to_ptr.hbm [resolvable:$true] %s660_s25 }
  0x34   : > { %336 = vmatpush.msra.mxu1 %v333_v6  ;;  %v330_v11 = vld [vmem:[#allocation8 + $0x58] sm:$0xff]  ;;  %v285_v12 = vld [vmem:[#allocation6 + $0x40] sm:$0xff]  ;;  %v329_v13 = vld [vmem:[#allocation8 + $0x50] sm:$0xff]  ;;  %s662_s7 = scalar_lea.hbm %s661_s25, 8  ;;  %p667_p12 = scmp.lt.s32.totalorder %s661_s25, %s915_s5 }
  0x35   : > { %299 = vmatpush.msra.mxu0 %v290_v2  ;;  %v284_v14 = vld [vmem:[#allocation6 + $0x38] sm:$0xff]  ;;  %v328_v15 = vld [vmem:[#allocation8 + $0x48] sm:$0xff]  ;;  %v283_v16 = vld [vmem:[#allocation6 + $0x30] sm:$0xff]  ;;  %p663_p1 = scmp.ne.s32.totalorder %s661_s25, %s662_s7  ;;  %p668_p7 = scmp.lt.s32.totalorder %s666_s17, %s662_s7 }
  0x36   : > { %337 = vmatpush.msra.mxu1 %v332_v7  ;;  %v327_v17 = vld [vmem:[#allocation8 + $0x40] sm:$0xff]  ;;  %v282_v18 = vld [vmem:[#allocation6 + $0x28] sm:$0xff]  ;;  %v326_v19 = vld [vmem:[#allocation8 + $0x38] sm:$0xff] }
  0x37   : > { %300 = vmatpush.msra.mxu0 %v289_v3  ;;  %v281_v20 = vld [vmem:[#allocation6 + $0x20] sm:$0xff]  ;;  %v325_v21 = vld [vmem:[#allocation8 + $0x30] sm:$0xff]  ;;  %v280_v22 = vld [vmem:[#allocation6 + $0x18] sm:$0xff]  ;;  %p664_p3 = pnand %p663_p1, %p821_p4  ;;  %p669_p8 = por %p668_p7, %p667_p12 }
  0x38   : > { %338 = vmatpush.msra.mxu1 %v331_v9  ;;  %v324_v23 = vld [vmem:[#allocation8 + $0x28] sm:$0xff]  ;;  %v279_v24 = vld [vmem:[#allocation6 + $0x10] sm:$0xff]  ;;  %v323_v25 = vld [vmem:[#allocation8 + $0x20] sm:$0xff] }
  0x39   : > { %301 = vmatpush.msra.mxu0 %v288_v5  ;;  %v278_v26 = vld [vmem:[#allocation6 + $0x8] sm:$0xff]  ;;  %v322_v27 = vld [vmem:[#allocation8 + $0x18] sm:$0xff]  ;;  %v277_v28 = vld [vmem:[#allocation6] sm:$0xff]  ;;  %p665_p5 = pneg %p664_p3 }
  0x3a   : > { %339 = vmatpush.msra.mxu1 %v330_v11  ;;  %v275_v29 = vld [vmem:[%s858_s13] sm:$0xff]  ;;  %v320_v31 = vld [vmem:[#allocation8 + $0x8] sm:$0xff]  ;;  %v319_v32 = vld [vmem:[#allocation8] sm:$0xff] }
  0x3b   : > { %302 = vmatpush.msra.mxu0 %v287_v8  ;;  %v321_v30 = vld [vmem:[#allocation8 + $0x10] sm:$0xff]  ;;  %p670_p9 = pnand %p669_p8, %p665_p5 }
  0x3c   : > { %340 = vmatpush.msra.mxu1 %v329_v13  ;;  %v554_v33 = vld [vmem:[%s912_s2] ss:$0 sm:$0xff] }
  0x3d   : > { %303 = vmatpush.msra.mxu0 %v286_v10  ;;  %v555_v37 = vld [vmem:[%s914_s4] ss:$0 sm:$0xff] }
  0x3e   : > { %341 = vmatpush.msra.mxu1 %v328_v15 }
  0x3f   : > { %304 = vmatpush.msra.mxu0 %v285_v12 }
  0x40   : > { %342 = vmatpush.msra.mxu1 %v327_v17 }
  0x41   : > { %305 = vmatpush.msra.mxu0 %v284_v14 }
  0x42   : > { %343 = vmatpush.msra.mxu1 %v326_v19 }
  0x43   : > { %306 = vmatpush.msra.mxu0 %v283_v16 }
  0x44   : > { %344 = vmatpush.msra.mxu1 %v325_v21 }
  0x45   : > { %307 = vmatpush.msra.mxu0 %v282_v18 }
  0x46   : > { %345 = vmatpush.msra.mxu1 %v324_v23 }
  0x47   : > { %308 = vmatpush.msra.mxu0 %v281_v20 }
  0x48   : > { %346 = vmatpush.msra.mxu1 %v323_v25 }
  0x49   : > { %309 = vmatpush.msra.mxu0 %v280_v22 }
  0x4a   : > { %347 = vmatpush.msra.mxu1 %v322_v27 }
  0x4b   : > { %310 = vmatpush.msra.mxu0 %v279_v24 }
  0x4c   : > { %348 = vmatpush.msra.mxu1 %v321_v30 }
  0x4d   : > { %311 = vmatpush.msra.mxu0 %v278_v26 }
  0x4e   : > { %349 = vmatpush.msra.mxu1 %v320_v31 }
  0x4f   : > { %312 = vmatpush.msra.mxu0 %v277_v28 }
  0x50   : > { %313 = vmatmul.f32.vlgmr.msra.gmra.mxu0 %v275_v29  ;;  %350 = vmatpush.msra.mxu1 %v319_v32 }
  0xcd   : > { %v314_v34 = vpop.f32.mrf.mxu0 }
  0xce   : > { %v315_v35 = vadd.f32 %v554_v33, %v314_v34 }
  0xd0   : > { %v317_v36 = vmax.f32 %v315_v35, 0.0 }
  0xd2   : > { %351 = vmatmul.f32.vlgmr.msra.gmra.mxu1 %v317_v36 }
 0x14f   : > { %v352_v38 = vpop.f32.mrf.mxu1 }
 0x150   : > { %v362_v39 = vadd.f32 %v555_v37, %v352_v38 }
 0x152   : > { %363 = vst [vmem:[%s274_s28] sm:$0xff] %v362_v39 }
 0x153   : > { %673 = shalt.err (!%p670_p9)
}
 0x154   : > { %495 = dma.vmem_to_hbm [thread:$0]  (%p821_p4), %s378_s29, 128, %s380_s30, %s365_s16  }
 0x155 PF: > { %s391_s22 = sand.u32 1, %s704_s18   ;;  %p922_p10 = scmp.ge.s32.totalorder %s716_s21, 2 }
 0x156   : > { %s392_s9 = scalar_lea.sflag [#allocation5], %s391_s22 }
 0x157   : > { %p509_p13 = pnand %p922_p10, %p825_p6 }
 0x159   : > { %p510_p11 = pneg %p509_p13 }
 0x15b   : > { %699 = dma.done.wait (%p510_p11), %s392_s9, 128  }
 0x15c   : > { %701 = vsyncadd (%p510_p11), %s392_s9, 4294967168  ;;  %p19_p0 = scmp.ge.s32.totalorder %s795_s12, 4   ;;  %s923_s18 = smov %s708_s19 }
 0x15d   : > { %s924_s19 = smov %s712_s20  ;;  %s925_s20 = smov %s806_s15 }
 0x15e   : > { %s926_s21 = smov %s795_s12  ;;  %21 = sbr.rel (!%p19_p0) target bundleno = 6 (0x6), region = 93 }
 0x163   :  { %398 = vsyncpa [#allocation4], 1 }
 0x164   :  { %400 = vsyncpa [#allocation4 + $0x1], 1 }
 0x165   :  { %401 = vsyncpa [#allocation7], 1 }
 0x166   :  { %402 = vsyncpa [#allocation5], 1 }
 0x167   :  { %404 = vsyncpa [#allocation5 + $0x1], 1 }

// kernel: tpu_custom_call.1
= control target key start
LH: loop header
LB: loop body
LE: loop exit
PB: predicated region body
PF: predicated region fallthrough
CT: control target
= control target key end

     0   :  { %10 = vsyncpa [#allocation4], 0  ;;  %s910_s0 = inlined_call_operand.hbm [shape: f32[16,128], index: 0, kind: input, shape index: {}]   ;;  %s911_s1 = inlined_call_operand.hbm [shape: f32[1,128,128], index: 1, kind: input, shape index: {}]   ;;  %s912_s2 = inlined_call_operand.vmem [shape: f32[1,1,128], index: 2, kind: input, shape index: {}]   ;;  %s913_s3 = inlined_call_operand.hbm [shape: f32[1,128,128], index: 3, kind: input, shape index: {}]   ;;  %s914_s4 = inlined_call_operand.vmem [shape: f32[1,128], index: 4, kind: input, shape index: {}]   ;;  %s915_s5 = inlined_call_operand.hbm [shape: f32[16,128], index: 5, kind: output, shape index: {}]  }
   0x1   :  { %12 = vsyncpa [#allocation4 + $0x1], 0 }
   0x2   :  { %13 = vsyncpa [#allocation7], 0 }
   0x3   :  { %14 = vsyncpa [#allocation5], 0 }
   0x4   :  { %16 = vsyncpa [#allocation5 + $0x1], 0  ;;  %s752_s18 = smov 0   ;;  %s754_s19 = smov 0  }
   0x5   :  { %s756_s20 = smov 0   ;;  %s758_s21 = smov 0  }
   0x6 LB: > { %s174_s24 = sshll.u32 %s911_s1, 4  ;;  %s776_s25 = sadd.s32 4294967295, %s716_s21   ;;  %s716_s21 = sphi %s758_s21, %s926_s21   ;;  %s712_s20 = sphi %s756_s20, %s925_s20   ;;  %s708_s19 = sphi %s754_s19, %s924_s19   ;;  %s704_s18 = sphi %s752_s18, %s923_s18   ;;  %s175_s24 = int_to_ptr.hbm [resolvable:$true] %s174_s24 }
   0x7   : > { %p470_p0 = scmp.ge.s32.totalorder %s716_s21, 1  ;;  %p43_p1 = scmp.eq.s32.totalorder %s776_s25, 0 }
   0x8   : > { %p163_p2 = scmp.lt.s32.totalorder %s716_s21, 3  ;;  %s718_s27 = smov [#allocation6]  }
   0x9   : > { %s176_s28 = sshll.u32 %s718_s27, 4  ;;  %s191_s6 = sshll.u32 %s913_s3, 4  ;;  %s177_s28 = int_to_ptr.vmem [resolvable:$true] %s176_s28  ;;  %s192_s6 = int_to_ptr.hbm [resolvable:$true] %s191_s6 }
   0xa   : > { %p781_p3 = pnand %p470_p0, %p163_p2  ;;  %s719_s7 = smov [#allocation8]  }
   0xb   : > { %s193_s8 = sshll.u32 %s719_s7, 4  ;;  %s720_s9 = smov 128   ;;  %s194_s8 = int_to_ptr.vmem [resolvable:$true] %s193_s8 }
   0xc   : > { %p497_p4 = pneg %p781_p3  ;;  %s721_s10 = smov 8  }
   0xd   : > { %s469_s11 = sadd.s32 4294967294, %s716_s21   ;;  %s795_s12 = sadd.s32 1, %s716_s21  }
   0xe   : > { %p498_p6 = pnand %p497_p4, %p43_p1  ;;  %s26_s13 = ssub.s32 %s716_s21, %s795_s12 }
   0xf   : > { %s29_s14 = sadd.s32 1, %s712_s20  ;;  %p27_p7 = scmp.eq.s32.totalorder %s26_s13, 0 }
  0x10   : > { %500 = dma.hbm_to_vmem [thread:$0]  (!%p498_p6), %s175_s24, 2048, %s177_s28, [#allocation7], %s720_s9, %s720_s9, %s721_s10  }
  0x11   : > { %503 = dma.hbm_to_vmem [thread:$0]  (!%p498_p6), %s192_s6, 2048, %s194_s8, [#allocation7], %s720_s9, %s720_s9, %s721_s10  }
  0x12   : > { %p36_p8 = scmp.ne.s32.totalorder %s712_s20, %s708_s19  ;;  %p37_p9 = scmp.eq.s32.totalorder %s716_s21, 0 }
  0x13   : > { %p42_p10 = scmp.ne.s32.totalorder %s708_s19, %s704_s18  ;;  %p150_p13 = scmp.eq.s32.totalorder %s776_s25, 1 }
  0x14   : > { %s806_s15 = scalar_select %p27_p7, %s712_s20, %s29_s14  }
  0x15   : > { %p808_p11 = por %p37_p9, %p36_p8  ;;  %p814_p12 = por %p43_p1, %p42_p10 }
  0x16   : > { %p156_p0 = scmp.eq.s32.totalorder %s469_s11, 1  ;;  %p514_p2 = scmp.lt.s32.totalorder %s716_s21, 2 }
  0x17   : > { %s210_s22 = sand.u32 1, %s712_s20   ;;  %p821_p4 = por %p150_p13, %p36_p8 }
  0x18   : > { %p825_p6 = por %p156_p0, %p42_p10  ;;  %s474_s27 = sshll.u32 %s210_s22, 3 }
  0x19   : > { %s475_s28 = sshll.u32 %s716_s21, 3  ;;  %s214_s7 = scalar_lea.vmem [#allocation3], %s474_s27 }
  0x1a   : > { %s218_s6 = scalar_lea.hbm %s910_s0, %s475_s28  ;;  %s222_s8 = sshll.u32 %s214_s7, 4  ;;  %s223_s8 = int_to_ptr.vmem [resolvable:$true] %s222_s8 }
  0x1b   : > { %s220_s9 = sshll.u32 %s218_s6, 4  ;;  %p835_p7 = pnand %p514_p2, %p808_p11  ;;  %s221_s9 = int_to_ptr.hbm [resolvable:$true] %s220_s9 }
  0x1c   : > { %s211_s11 = scalar_lea.sflag [#allocation4], %s210_s22  ;;  %s616_s13 = sshra.s32 %s221_s9, 4  ;;  %s617_s13 = int_to_ptr.hbm [resolvable:$true] %s616_s13 }
  0x1d   : > { %s618_s14 = scalar_lea.hbm %s617_s13, 8  ;;  %p620_p9 = pneg %p835_p7 }
  0x1e   : > { %p619_p8 = scmp.ne.s32.totalorder %s617_s13, %s618_s14  ;;  %s623_s29 = scalar_lea.hbm %s910_s0, 16 }
  0x1f   : > { %p624_p11 = scmp.lt.s32.totalorder %s617_s13, %s910_s0  ;;  %p625_p0 = scmp.lt.s32.totalorder %s623_s29, %s618_s14 }
  0x20   : > { %p621_p10 = pnand %p620_p9, %p619_p8 }
  0x21   : > { %p626_p2 = por %p625_p0, %p624_p11 }
  0x22   : > { %p622_p13 = pneg %p621_p10 }
  0x24   : > { %p627_p5 = pnand %p626_p2, %p622_p13 }
  0x26   : > { %630 = shalt.err (!%p627_p5)
}
  0x27   : > { %507 = dma.hbm_to_vmem [thread:$0]  (!%p835_p7), %s221_s9, 128, %s223_s8, %s211_s11  }
  0x28   : > { %231 = sbr.rel (%p781_p3) target bundleno = 341 (0x155), region = 40  ;;  %s852_s22 = sand.u32 (!%p781_p3), 1, %s708_s19  }
  0x29   : > { %s477_s6 = sshll.u32 (!%p781_p3), %s852_s22, 3  ;;  %s234_s7 = scalar_lea.sflag (!%p781_p3), [#allocation4], %s852_s22 }
  0x2a   : > { %s858_s13 = scalar_lea.vmem (!%p781_p3), [#allocation3], %s477_s6 }
  0x2d   : > { %691 = dma.done.wait (%p814_p12), %s234_s7, 128  }
  0x2e   : > { %693 = vsyncadd (%p814_p12), %s234_s7, 4294967168 }
  0x2f   : > { %695 = dma.done.wait (%p43_p1), [#allocation7], 4096  }
  0x30   : > { %697 = vsyncadd (%p43_p1), [#allocation7], 4294963200  ;;  %v292_v0 = vld [vmem:[#allocation6 + $0x78] sm:$0xff]  ;;  %v291_v1 = vld [vmem:[#allocation6 + $0x70] sm:$0xff]  ;;  %s482_s8 = sshll.u32 %s776_s25, 3  ;;  %s274_s28 = scalar_lea.vmem [#allocation9], %s477_s6 }
  0x31   : > { %297 = vmatpush.msra.mxu0 %v292_v0  ;;  %v290_v2 = vld [vmem:[#allocation6 + $0x68] sm:$0xff]  ;;  %v289_v3 = vld [vmem:[#allocation6 + $0x60] sm:$0xff]  ;;  %v334_v4 = vld [vmem:[#allocation8 + $0x78] sm:$0xff]  ;;  %s375_s11 = scalar_lea.hbm %s915_s5, %s482_s8  ;;  %s377_s29 = sshll.u32 %s274_s28, 4  ;;  %s378_s29 = int_to_ptr.vmem [resolvable:$true] %s377_s29 }
  0x32   : > { %v288_v5 = vld [vmem:[#allocation6 + $0x58] sm:$0xff]  ;;  %335 = vmatpush.msra.mxu1 %v334_v4  ;;  %v333_v6 = vld [vmem:[#allocation8 + $0x70] sm:$0xff]  ;;  %v332_v7 = vld [vmem:[#allocation8 + $0x68] sm:$0xff]  ;;  %s379_s30 = sshll.u32 %s375_s11, 4  ;;  %s365_s16 = scalar_lea.sflag [#allocation5], %s852_s22  ;;  %s380_s30 = int_to_ptr.hbm [resolvable:$true] %s379_s30 }
  0x33   : > { %298 = vmatpush.msra.mxu0 %v291_v1  ;;  %v287_v8 = vld [vmem:[#allocation6 + $0x50] sm:$0xff]  ;;  %v331_v9 = vld [vmem:[#allocation8 + $0x60] sm:$0xff]  ;;  %v286_v10 = vld [vmem:[#allocation6 + $0x48] sm:$0xff]  ;;  %s660_s25 = sshra.s32 %s380_s30, 4  ;;  %s666_s17 = scalar_lea.hbm %s915_s5, 16  ;;  %s661_s25 = int_to_ptr.hbm [resolvable:$true] %s660_s25 }
  0x34   : > { %336 = vmatpush.msra.mxu1 %v333_v6  ;;  %v330_v11 = vld [vmem:[#allocation8 + $0x58] sm:$0xff]  ;;  %v285_v12 = vld [vmem:[#allocation6 + $0x40] sm:$0xff]  ;;  %v329_v13 = vld [vmem:[#allocation8 + $0x50] sm:$0xff]  ;;  %s662_s7 = scalar_lea.hbm %s661_s25, 8  ;;  %p667_p12 = scmp.lt.s32.totalorder %s661_s25, %s915_s5 }
  0x35   : > { %299 = vmatpush.msra.mxu0 %v290_v2  ;;  %v284_v14 = vld [vmem:[#allocation6 + $0x38] sm:$0xff]  ;;  %v328_v15 = vld [vmem:[#allocation8 + $0x48] sm:$0xff]  ;;  %v283_v16 = vld [vmem:[#allocation6 + $0x30] sm:$0xff]  ;;  %p663_p1 = scmp.ne.s32.totalorder %s661_s25, %s662_s7  ;;  %p668_p7 = scmp.lt.s32.totalorder %s666_s17, %s662_s7 }
  0x36   : > { %337 = vmatpush.msra.mxu1 %v332_v7  ;;  %v327_v17 = vld [vmem:[#allocation8 + $0x40] sm:$0xff]  ;;  %v282_v18 = vld [vmem:[#allocation6 + $0x28] sm:$0xff]  ;;  %v326_v19 = vld [vmem:[#allocation8 + $0x38] sm:$0xff] }
  0x37   : > { %300 = vmatpush.msra.mxu0 %v289_v3  ;;  %v281_v20 = vld [vmem:[#allocation6 + $0x20] sm:$0xff]  ;;  %v325_v21 = vld [vmem:[#allocation8 + $0x30] sm:$0xff]  ;;  %v280_v22 = vld [vmem:[#allocation6 + $0x18] sm:$0xff]  ;;  %p664_p3 = pnand %p663_p1, %p821_p4  ;;  %p669_p8 = por %p668_p7, %p667_p12 }
  0x38   : > { %338 = vmatpush.msra.mxu1 %v331_v9  ;;  %v324_v23 = vld [vmem:[#allocation8 + $0x28] sm:$0xff]  ;;  %v279_v24 = vld [vmem:[#allocation6 + $0x10] sm:$0xff]  ;;  %v323_v25 = vld [vmem:[#allocation8 + $0x20] sm:$0xff] }
  0x39   : > { %301 = vmatpush.msra.mxu0 %v288_v5  ;;  %v278_v26 = vld [vmem:[#allocation6 + $0x8] sm:$0xff]  ;;  %v322_v27 = vld [vmem:[#allocation8 + $0x18] sm:$0xff]  ;;  %v277_v28 = vld [vmem:[#allocation6] sm:$0xff]  ;;  %p665_p5 = pneg %p664_p3 }
  0x3a   : > { %339 = vmatpush.msra.mxu1 %v330_v11  ;;  %v275_v29 = vld [vmem:[%s858_s13] sm:$0xff]  ;;  %v320_v31 = vld [vmem:[#allocation8 + $0x8] sm:$0xff]  ;;  %v319_v32 = vld [vmem:[#allocation8] sm:$0xff] }
  0x3b   : > { %302 = vmatpush.msra.mxu0 %v287_v8  ;;  %v321_v30 = vld [vmem:[#allocation8 + $0x10] sm:$0xff]  ;;  %p670_p9 = pnand %p669_p8, %p665_p5 }
  0x3c   : > { %340 = vmatpush.msra.mxu1 %v329_v13  ;;  %v554_v33 = vld [vmem:[%s912_s2] ss:$0 sm:$0xff] }
  0x3d   : > { %303 = vmatpush.msra.mxu0 %v286_v10  ;;  %v555_v37 = vld [vmem:[%s914_s4] ss:$0 sm:$0xff] }
  0x3e   : > { %341 = vmatpush.msra.mxu1 %v328_v15 }
  0x3f   : > { %304 = vmatpush.msra.mxu0 %v285_v12 }
  0x40   : > { %342 = vmatpush.msra.mxu1 %v327_v17 }
  0x41   : > { %305 = vmatpush.msra.mxu0 %v284_v14 }
  0x42   : > { %343 = vmatpush.msra.mxu1 %v326_v19 }
  0x43   : > { %306 = vmatpush.msra.mxu0 %v283_v16 }
  0x44   : > { %344 = vmatpush.msra.mxu1 %v325_v21 }
  0x45   : > { %307 = vmatpush.msra.mxu0 %v282_v18 }
  0x46   : > { %345 = vmatpush.msra.mxu1 %v324_v23 }
  0x47   : > { %308 = vmatpush.msra.mxu0 %v281_v20 }
  0x48   : > { %346 = vmatpush.msra.mxu1 %v323_v25 }
  0x49   : > { %309 = vmatpush.msra.mxu0 %v280_v22 }
  0x4a   : > { %347 = vmatpush.msra.mxu1 %v322_v27 }
  0x4b   : > { %310 = vmatpush.msra.mxu0 %v279_v24 }
  0x4c   : > { %348 = vmatpush.msra.mxu1 %v321_v30 }
  0x4d   : > { %311 = vmatpush.msra.mxu0 %v278_v26 }
  0x4e   : > { %349 = vmatpush.msra.mxu1 %v320_v31 }
  0x4f   : > { %312 = vmatpush.msra.mxu0 %v277_v28 }
  0x50   : > { %313 = vmatmul.f32.vlgmr.msra.gmra.mxu0 %v275_v29  ;;  %350 = vmatpush.msra.mxu1 %v319_v32 }
  0xcd   : > { %v314_v34 = vpop.f32.mrf.mxu0 }
  0xce   : > { %v315_v35 = vadd.f32 %v554_v33, %v314_v34 }
  0xd0   : > { %v317_v36 = vmax.f32 %v315_v35, 0.0 }
  0xd2   : > { %351 = vmatmul.f32.vlgmr.msra.gmra.mxu1 %v317_v36 }
 0x14f   : > { %v352_v38 = vpop.f32.mrf.mxu1 }
 0x150   : > { %v362_v39 = vadd.f32 %v555_v37, %v352_v38 }
 0x152   : > { %363 = vst [vmem:[%s274_s28] sm:$0xff] %v362_v39 }
 0x153   : > { %673 = shalt.err (!%p670_p9)
}
 0x154   : > { %495 = dma.vmem_to_hbm [thread:$0]  (%p821_p4), %s378_s29, 128, %s380_s30, %s365_s16  }
 0x155 PF: > { %s391_s22 = sand.u32 1, %s704_s18   ;;  %p922_p10 = scmp.ge.s32.totalorder %s716_s21, 2 }
 0x156   : > { %s392_s9 = scalar_lea.sflag [#allocation5], %s391_s22 }
 0x157   : > { %p509_p13 = pnand %p922_p10, %p825_p6 }
 0x159   : > { %p510_p11 = pneg %p509_p13 }
 0x15b   : > { %699 = dma.done.wait (%p510_p11), %s392_s9, 128  }
 0x15c   : > { %701 = vsyncadd (%p510_p11), %s392_s9, 4294967168  ;;  %p19_p0 = scmp.ge.s32.totalorder %s795_s12, 4   ;;  %s923_s18 = smov %s708_s19 }
 0x15d   : > { %s924_s19 = smov %s712_s20  ;;  %s925_s20 = smov %s806_s15 }
 0x15e   : > { %s926_s21 = smov %s795_s12  ;;  %21 = sbr.rel (!%p19_p0) target bundleno = 6 (0x6), region = 93 }
 0x163   :  { %398 = vsyncpa [#allocation4], 1 }
 0x164   :  { %400 = vsyncpa [#allocation4 + $0x1], 1 }
 0x165   :  { %401 = vsyncpa [#allocation7], 1 }
 0x166   :  { %402 = vsyncpa [#allocation5], 1 }
 0x167   :  { %404 = vsyncpa [#allocation5 + $0x1], 1 }

</bundles_post_ra>
